<compile_context>
chip_gen: v7x
topology: tpu7x:2x2x1
jax: 0.10.0
libtpu: 0.0.40
codegen_flags: <defaults>
</compile_context>

<pallas_src>
import math

import jax
import jax.numpy as jnp
from jax.experimental import pallas as pl
from jax.experimental.pallas import tpu as pltpu


_VMEM_LIMIT_BYTES = 48 << 20      # < v7x 64 MiB physical; plenty of slack on v5e/v6e
_BLOCK_BUDGET_BYTES = 8 << 20     # ~8 MiB lane-dense blocks
_SPLIT_THRESHOLD_BYTES = 4 << 20  # force >= 2 grid steps above this (dual-TC on v7x)


def _affine_kernel(x_ref, o_ref):
    # x*2 + 3 - 1 == x*2 + 2, computed as x + x + 2 with a dtype-matched constant
    # (bit-exact for float and integer dtypes, no upcast).
    x = x_ref[...]
    o_ref[...] = x + x + jnp.asarray(2, dtype=x.dtype)


def _choose_lanes(total):
    # Widest lane-dense width (multiple of 128) dividing the element count.
    for cand in (32768, 16384, 8192, 4096, 2048, 1024, 512, 256, 128):
        if total % cand == 0:
            return cand
    return 128


def _run_lane_dense(x2d):
    """Run the affine kernel over a lane-dense (rows, lanes) slab."""
    rows, lanes = x2d.shape
    dtype = x2d.dtype
    itemsize = jnp.dtype(dtype).itemsize

    # Sublane alignment matching native tiles: 8 (32-bit) / 16 (16-bit) / 32 (8-bit).
    row_align = max(8, 32 // max(1, itemsize))
    row_bytes = lanes * itemsize
    target_rows = max(row_align,
                      (_BLOCK_BUDGET_BYTES // row_bytes) // row_align * row_align)

    data_bytes = rows * row_bytes
    if rows <= target_rows:
        if data_bytes >= _SPLIT_THRESHOLD_BYTES and rows >= 2 * row_align:
            # Mid-sized single-block case: two blocks lets the "parallel" axis shard
            # across v7x's two TensorCores; <= ~7% extra step overhead on v5e/v6e.
            block_rows = pl.cdiv(pl.cdiv(rows, 2), row_align) * row_align
        else:
            block_rows = rows          # single block == full array dims
    else:
        block_rows = target_rows       # multiple of row_align; lanes multiple of 128
    grid = (pl.cdiv(rows, block_rows),)

    total = rows * lanes
    cost = pl.CostEstimate(flops=2 * total, transcendentals=0,
                           bytes_accessed=2 * total * itemsize)

    return pl.pallas_call(
        _affine_kernel,
        out_shape=jax.ShapeDtypeStruct((rows, lanes), dtype),
        grid_spec=pltpu.PrefetchScalarGridSpec(
            num_scalar_prefetch=0,
            grid=grid,
            in_specs=[pl.BlockSpec((block_rows, lanes), lambda i: (i, 0))],
            out_specs=pl.BlockSpec((block_rows, lanes), lambda i: (i, 0)),
        ),
        compiler_params=pltpu.CompilerParams(
            dimension_semantics=("parallel",),
            vmem_limit_bytes=_VMEM_LIMIT_BYTES,
        ),
        cost_estimate=cost,
    )(x2d)


def _run_tail(x_tail):
    """Tiny kernel for a ragged tail (< 128 elements); block == full array dims."""
    n = x_tail.shape[0]
    cost = pl.CostEstimate(flops=2 * n, transcendentals=0,
                           bytes_accessed=2 * n * jnp.dtype(x_tail.dtype).itemsize)
    return pl.pallas_call(
        _affine_kernel,
        out_shape=jax.ShapeDtypeStruct((1, n), x_tail.dtype),
        grid_spec=pltpu.PrefetchScalarGridSpec(
            num_scalar_prefetch=0,
            grid=(1,),
            in_specs=[pl.BlockSpec((1, n), lambda i: (0, 0))],
            out_specs=pl.BlockSpec((1, n), lambda i: (0, 0)),
        ),
        compiler_params=pltpu.CompilerParams(
            dimension_semantics=("arbitrary",),
            vmem_limit_bytes=_VMEM_LIMIT_BYTES,
        ),
        cost_estimate=cost,
    )(x_tail.reshape(1, n)).reshape(n)


def pt_module_forward(x):
    """Elementwise x*2+2 via a tiled, lane-dense Pallas kernel."""
    orig_shape = x.shape
    total = math.prod(orig_shape)
    if total == 0:
        return x

    lanes = _choose_lanes(total)
    x_flat = x.reshape(-1)

    if total % lanes == 0:
        # Common path: pure reshape, no extra HBM copies.
        out2d = _run_lane_dense(x_flat.reshape(total // lanes, lanes))
        return out2d.reshape(orig_shape)

    # Rare ragged fallback (element count not a multiple of 128): aligned prefix via
    # the main kernel, tail via a tiny second kernel -- no full-array pad/slice.
    # TODO(synk): fold the tail into the main kernel with a masked-store tile to drop
    # the remaining prefix-slice / concatenate copies.
    aligned = (total // lanes) * lanes
    pieces = []
    if aligned:
        prefix = _run_lane_dense(x_flat[:aligned].reshape(aligned // lanes, lanes))
        pieces.append(prefix.reshape(-1))
    pieces.append(_run_tail(x_flat[aligned:]))
    return jnp.concatenate(pieces).reshape(orig_shape)


if __name__ == "__main__":
    key = jax.random.PRNGKey(0)
    # Small NCHW input consistent with the module's indexing over >= 3 dims.
    x = jax.random.normal(key, (2, 4, 16, 16), dtype=jnp.float32)

    out = pt_module_forward(x)
    out = jax.block_until_ready(out)

    # Reference check against the exact PyTorch semantics (x*2 + 3 - 1).
    ref = x * 2.0 + 3.0 - 1.0
    assert out.shape == x.shape
    assert out.dtype == x.dtype
    assert jnp.allclose(out, ref, atol=1e-6, rtol=1e-6)

    print("KERNEL_OK")
</pallas_src>

<mosaic_0001>
module attributes {stable_mosaic.version = 11 : i64} {
  func.func @_affine_kernel(%arg0: i32, %arg1: memref<1x2048xf32, #tpu.memory_space<vmem>>, %arg2: memref<1x2048xf32, #tpu.memory_space<vmem>>) attributes {dimension_semantics = [#tpu.dimension_semantics<parallel>], iteration_bounds = array<i64: 1>, scalar_prefetch = 0 : i64, scratch_operands = 0 : i64, tpu.core_type = #tpu.core_type<tc>, window_params = [{transform_indices = @transform_0, window_bounds = array<i64: 1, 2048>}, {transform_indices = @transform_1, window_bounds = array<i64: 1, 2048>}]} {
    %c0 = arith.constant 0 : index
    %c0_0 = arith.constant 0 : index
    %0 = vector.load %arg1[%c0, %c0_0] : memref<1x2048xf32, #tpu.memory_space<vmem>>, vector<1x2048xf32>
    %1 = arith.addf %0, %0 : vector<1x2048xf32>
    %cst = arith.constant 2.000000e+00 : f32
    %2 = vector.broadcast %cst : f32 to vector<1x2048xf32>
    %3 = arith.addf %1, %2 : vector<1x2048xf32>
    %c0_1 = arith.constant 0 : index
    %c0_2 = arith.constant 0 : index
    %4 = vector.load %arg2[%c0_1, %c0_2] : memref<1x2048xf32, #tpu.memory_space<vmem>>, vector<1x2048xf32>
    tpu.vector_store %arg2[%c0_1, %c0_2], %3 {strides = array<i32>} : memref<1x2048xf32, #tpu.memory_space<vmem>>, vector<1x2048xf32>,
    return
  }
  func.func @transform_0(%arg0: i32) -> (i32, i32) {
    %c0_i32 = arith.constant 0 : i32
    %c0_i32_0 = arith.constant 0 : i32
    return %arg0, %c0_i32 : i32, i32
  }
  func.func @transform_1(%arg0: i32) -> (i32, i32) {
    %c0_i32 = arith.constant 0 : i32
    %c0_i32_0 = arith.constant 0 : i32
    return %arg0, %c0_i32 : i32, i32
  }
}

</mosaic_0001>

<bundles_post_ra>
// kernel: tpu_custom_call.1
= control target key start
LH: loop header
LB: loop body
LE: loop exit
PB: predicated region body
PF: predicated region fallthrough
CT: control target
= control target key end

     0   :  { %6 = vsyncpa [#allocation3], 0  ;;  %s130_s0 = inlined_call_operand.hbm [shape: f32[1,2048], index: 0, kind: input, shape index: {}]   ;;  %s131_s1 = inlined_call_operand.hbm [shape: f32[1,2048], index: 1, kind: output, shape index: {}]  }
   0x1   :  { %7 = vsyncpa [#allocation4], 0  ;;  %s94_s6 = smov [#allocation2]   ;;  %s46_s10 = scalar_lea.hbm %s130_s0, 256 }
   0x2   :  { %s14_s7 = sshll.u32 %s94_s6, 4  ;;  %p47_p0 = scmp.ne.s32.totalorder %s130_s0, %s46_s10  ;;  %s15_s7 = int_to_ptr.vmem [resolvable:$true] %s14_s7 }
   0x3   :  { %p50_p1 = scmp.lt.u32.totalorder %s46_s10, %s130_s0 }
   0x5   :  { %p52_p2 = pnand %p50_p1, %p47_p0 }
   0x7   :  { %55 = shalt.err (!%p52_p2)
}
   0x8   :  { %s56_s15 = scalar_lea.vmem %s15_s7, 256  ;;  %p61_p4 = scmp.lt.s32.totalorder %s15_s7, %s15_s7 }
   0x9   :  { %p57_p3 = scmp.ne.s32.totalorder %s15_s7, %s56_s15  ;;  %p62_p5 = scmp.lt.s32.totalorder %s56_s15, %s56_s15 }
   0xb   :  { %p63_p6 = por %p62_p5, %p61_p4 }
   0xd   :  { %p64_p7 = pnand %p63_p6, %p57_p3 }
   0xf   :  { %67 = shalt.err (!%p64_p7)
}
  0x10   :  { %17 = dma.hbm_to_vmem [thread:$0]  %s130_s0, 256, %s15_s7, [#allocation3]  }
  0x11   :  { %90 = dma.done.wait [#allocation3], 256  }
  0x12   :  { %91 = vsyncadd [#allocation3], 4294967040  ;;  %v21_v0 = vld [vmem:[#allocation2] sm:$0xff]  ;;  %v22_v1 = vld [vmem:[#allocation2 + $0x8] sm:$0xff]  ;;  %s95_s18 = smov [#allocation5]  }
  0x13   :  { %s35_s19 = sshll.u32 %s95_s18, 4  ;;  %v23_v2 = vadd.f32 %v21_v0, %v21_v0  ;;  %v24_v3 = vadd.f32 %v22_v1, %v22_v1  ;;  %s36_s19 = int_to_ptr.vmem [resolvable:$true] %s35_s19 }
  0x14   :  { %s68_s20 = scalar_lea.vmem %s36_s19, 256  ;;  %p73_p9 = scmp.lt.s32.totalorder %s36_s19, %s36_s19 }
  0x15   :  { %v25_v4 = vadd.f32 2.0, %v23_v2  ;;  %v26_v5 = vadd.f32 2.0, %v24_v3  ;;  %p69_p8 = scmp.ne.s32.totalorder %s36_s19, %s68_s20  ;;  %p74_p10 = scmp.lt.s32.totalorder %s68_s20, %s68_s20 }
  0x17   :  { %27 = vst [vmem:[#allocation5] sm:$0xff] %v25_v4  ;;  %28 = vst [vmem:[#allocation5 + $0x8] sm:$0xff] %v26_v5  ;;  %p75_p11 = por %p74_p10, %p73_p9 }
  0x19   :  { %p76_p12 = pnand %p75_p11, %p69_p8 }
  0x1b   :  { %79 = shalt.err (!%p76_p12)
}
  0x1c   :  { %s80_s22 = scalar_lea.hbm %s131_s1, 256 }
  0x1d   :  { %p81_p13 = scmp.ne.s32.totalorder %s131_s1, %s80_s22  ;;  %p84_p0 = scmp.lt.u32.totalorder %s80_s22, %s131_s1 }
  0x1f   :  { %p86_p1 = pnand %p84_p0, %p81_p13 }
  0x21   :  { %89 = shalt.err (!%p86_p1)
}
  0x22   :  { %38 = dma.vmem_to_hbm [thread:$0]  %s36_s19, 256, %s131_s1, [#allocation4]  }
  0x23   :  { %92 = dma.done.wait [#allocation4], 256  }
  0x24   :  { %93 = vsyncadd [#allocation4], 4294967040 }
  0x25   :  { %42 = vsyncpa [#allocation3], 1 }
  0x26   :  { %43 = vsyncpa [#allocation4], 1 }

</bundles_post_ra>
